<compile_context>
chip_gen: v7x
topology: tpu7x:2x2x1
jax: 0.10.0
libtpu: 0.0.40
codegen_flags: <defaults>
</compile_context>

<pallas_src>
import jax
import jax.numpy as jnp
from jax.experimental import pallas as pl
from jax.experimental.pallas import tpu as pltpu


def _logreg_kernel(x_ref, w_ref, b_ref, o_ref):
    # x_ref: (TILE_B, D) VMEM   w_ref: (D, 1) VMEM (resident)
    # b_ref: (1, 1) SMEM scalar o_ref: (TILE_B, 1) VMEM
    z = jnp.dot(x_ref[...], w_ref[...], preferred_element_type=jnp.float32)
    z = z + b_ref[0, 0]  # scalar add from SMEM
    # Exact sigmoid(z) = 1 / (1 + exp(-z)); exp issues on the EUP slot and the
    # divide is negligible next to the HBM-bound x stream.
    o_ref[...] = (1.0 / (1.0 + jnp.exp(-z))).astype(o_ref.dtype)


def _round_up(n, m):
    return ((n + m - 1) // m) * m


def _pick_tile_b(batch, input_dim):
    # Cap one x tile at ~8 MiB so 2x double-buffered input tiles (+ tiny
    # weight/output buffers) stay well under the 32 MiB scoped-VMEM default,
    # which also fits v7x (64 MiB physical VMEM per TensorCore).
    bytes_per_row = input_dim * 4
    cap_rows = max(8, ((8 * 1024 * 1024) // bytes_per_row) // 8 * 8)
    return min(1024, cap_rows, _round_up(batch, 8))


def logistic_regression_forward(x, weight, bias):
    """x: (B, D) f32; weight: (1, D) f32 (PyTorch nn.Linear layout); bias: (1,) f32."""
    B, D = x.shape
    x = x.astype(jnp.float32)
    w_t = weight.T.astype(jnp.float32)            # (D, 1), VMEM-resident
    b2 = bias.reshape(1, 1).astype(jnp.float32)   # (1, 1), SMEM scalar

    tile_b = _pick_tile_b(B, D)
    n_tiles = pl.cdiv(B, tile_b)
    b_pad = n_tiles * tile_b
    if b_pad != B:
        # Pad the batch so every grid tile is full; padded rows are sliced off.
        x = jnp.pad(x, ((0, b_pad - B), (0, 0)))

    out = pl.pallas_call(
        _logreg_kernel,
        out_shape=jax.ShapeDtypeStruct((b_pad, 1), jnp.float32),
        grid_spec=pl.GridSpec(
            grid=(n_tiles,),
            in_specs=[
                # x: streamed batch tiles, auto double-buffered.
                pl.BlockSpec((tile_b, D), lambda i: (i, 0)),
                # W^T: same block every step -> stays resident in VMEM.
                pl.BlockSpec((D, 1), lambda i: (0, 0)),
                # bias: scalar in SMEM.
                pl.BlockSpec((1, 1), lambda i: (0, 0), memory_space=pltpu.SMEM),
            ],
            out_specs=pl.BlockSpec((tile_b, 1), lambda i: (i, 0)),
        ),
        compiler_params=pltpu.CompilerParams(
            dimension_semantics=("parallel",),     # shard batch tiles across TCs (v7x)
            vmem_limit_bytes=32 * 1024 * 1024,     # safe on v5e/v6e/v7x with tile sizing above
        ),
    )(x, w_t, b2)

    return out[:B]


if __name__ == "__main__":
    key = jax.random.PRNGKey(0)
    k_x, k_w, k_b = jax.random.split(key, 3)

    batch, input_dim = 8, 32

    # Deterministic parameter init mirroring nn.Linear(input_dim, 1):
    # uniform(-1/sqrt(input_dim), 1/sqrt(input_dim)) for both weight and bias.
    bound = 1.0 / jnp.sqrt(jnp.float32(input_dim))
    weight = jax.random.uniform(k_w, (1, input_dim), jnp.float32, -bound, bound)
    bias = jax.random.uniform(k_b, (1,), jnp.float32, -bound, bound)

    x = jax.random.normal(k_x, (batch, input_dim), jnp.float32)

    y = logistic_regression_forward(x, weight, bias)
    y = jax.block_until_ready(y)

    # Reference check against plain JAX (exact sigmoid in both paths).
    z_ref = x @ weight.T + bias
    ref = 1.0 / (1.0 + jnp.exp(-z_ref))
    assert y.shape == (batch, 1)
    assert jnp.allclose(y, ref, atol=1e-5, rtol=1e-5), "mismatch vs reference"

    print("KERNEL_OK")
</pallas_src>

<mosaic_0001>
module attributes {stable_mosaic.version = 11 : i64} {
  func.func @_logreg_kernel(%arg0: i32, %arg1: memref<8x32xf32, #tpu.memory_space<vmem>>, %arg2: memref<32x1xf32, #tpu.memory_space<vmem>>, %arg3: memref<1x1xf32, #tpu.memory_space<smem>>, %arg4: memref<8x1xf32, #tpu.memory_space<vmem>>) attributes {dimension_semantics = [#tpu.dimension_semantics<parallel>], iteration_bounds = array<i64: 1>, scalar_prefetch = 0 : i64, scratch_operands = 0 : i64, tpu.core_type = #tpu.core_type<tc>, window_params = [{transform_indices = @transform_0, window_bounds = array<i64: 8, 32>}, {pipeline_mode = #tpu.pipeline_mode<synchronous>, transform_indices = @transform_1, window_bounds = array<i64: 32, 1>}, {transform_indices = @transform_2, window_bounds = array<i64: 1, 1>}, {transform_indices = @transform_3, window_bounds = array<i64: 8, 1>}]} {
    %c0 = arith.constant 0 : index
    %c0_0 = arith.constant 0 : index
    %0 = vector.load %arg1[%c0, %c0_0] : memref<8x32xf32, #tpu.memory_space<vmem>>, vector<8x32xf32>
    %c0_1 = arith.constant 0 : index
    %c0_2 = arith.constant 0 : index
    %1 = vector.load %arg2[%c0_1, %c0_2] : memref<32x1xf32, #tpu.memory_space<vmem>>, vector<32x1xf32>
    %cst = arith.constant dense<0.000000e+00> : vector<8x1xf32>
    %2 = tpu.matmul %0, %1, %cst {dimension_numbers = #tpu.dot_dimension_numbers<[1], [0], [0], [1], [0, 0, 1, 1], [], []>} : vector<8x32xf32>, vector<32x1xf32>, vector<8x1xf32> -> vector<8x1xf32>
    %c0_3 = arith.constant 0 : index
    %c0_4 = arith.constant 0 : index
    %3 = memref.load %arg3[%c0_3, %c0_4] : memref<1x1xf32, #tpu.memory_space<smem>>
    %4 = vector.broadcast %3 : f32 to vector<8x1xf32>
    %5 = arith.addf %2, %4 : vector<8x1xf32>
    %cst_5 = arith.constant 0.000000e+00 : f32
    %6 = vector.broadcast %cst_5 : f32 to vector<8x1xf32>
    %7 = arith.subf %6, %5 : vector<8x1xf32>
    %8 = math.exp %7 : vector<8x1xf32>
    %cst_6 = arith.constant 1.000000e+00 : f32
    %9 = vector.broadcast %cst_6 : f32 to vector<8x1xf32>
    %10 = arith.addf %9, %8 : vector<8x1xf32>
    %cst_7 = arith.constant 1.000000e+00 : f32
    %11 = vector.broadcast %cst_7 : f32 to vector<8x1xf32>
    %12 = arith.divf %11, %10 : vector<8x1xf32>
    %c0_8 = arith.constant 0 : index
    %c0_9 = arith.constant 0 : index
    %13 = vector.load %arg4[%c0_8, %c0_9] : memref<8x1xf32, #tpu.memory_space<vmem>>, vector<8x1xf32>
    tpu.vector_store %arg4[%c0_8, %c0_9], %12 {strides = array<i32>} : memref<8x1xf32, #tpu.memory_space<vmem>>, vector<8x1xf32>,
    return
  }
  func.func @transform_0(%arg0: i32) -> (i32, i32) {
    %c0_i32 = arith.constant 0 : i32
    %c0_i32_0 = arith.constant 0 : i32
    return %arg0, %c0_i32 : i32, i32
  }
  func.func @transform_1(%arg0: i32) -> (i32, i32) {
    %c0_i32 = arith.constant 0 : i32
    %c0_i32_0 = arith.constant 0 : i32
    %c0_i32_1 = arith.constant 0 : i32
    return %c0_i32, %c0_i32_0 : i32, i32
  }
  func.func @transform_2(%arg0: i32) -> (i32, i32) {
    %c0_i32 = arith.constant 0 : i32
    %c0_i32_0 = arith.constant 0 : i32
    %c0_i32_1 = arith.constant 0 : i32
    return %c0_i32, %c0_i32_0 : i32, i32
  }
  func.func @transform_3(%arg0: i32) -> (i32, i32) {
    %c0_i32 = arith.constant 0 : i32
    %c0_i32_0 = arith.constant 0 : i32
    return %arg0, %c0_i32 : i32, i32
  }
}

</mosaic_0001>

<bundles_post_ra>
// kernel: tpu_custom_call.1
= control target key start
LH: loop header
LB: loop body
LE: loop exit
PB: predicated region body
PF: predicated region fallthrough
CT: control target
= control target key end

     0   :  { %v138_v0 = vmov 0.0|0.0   ;;  %vm139_vm0 = vmmov 0   ;;  %v140_v4 = vmov 0.0   ;;  %vm22_vm1 = vcmask 261120   ;;  %s182_s1 = inlined_call_operand.vmem [shape: f32[32,1], index: 1, kind: input, shape index: {}]   ;;  %s183_s0 = inlined_call_operand.vmem [shape: f32[8,32], index: 0, kind: input, shape index: {}]   ;;  %s184_s2 = inlined_call_operand.<no memory space> [shape: f32[1,1], index: 2, kind: input, shape index: {}]   ;;  %s185_s3 = inlined_call_operand.vmem [shape: f32[8,1], index: 3, kind: output, shape index: {}]  }
   0x1   :  { %125 = vmatprep.subr.bf16.mxu0 %v138_v0  ;;  %v16_v1 = vld [vmem:[%s182_s1] sm:$0xff]  ;;  %v17_v2 = vld [vmem:[%s182_s1 + $0x8] sm:$0xff]  ;;  %v18_v3 = vld [vmem:[%s182_s1 + $0x10] sm:$0xff]  ;;  %122 = vmatprep.mubr.msk.f32.mxu0 %vm139_vm0, %v140_v4  ;;  %v21_v9 = vstv %s184_s2  ;;  %vm102_vm2 = vcmask 7168  }
   0x2   :  { %v126_v5 = vpack.c.bf16 %v17_v2, %v16_v1  ;;  %v19_v6 = vld [vmem:[%s182_s1 + $0x18] sm:$0xff]  ;;  %v15_v8 = vld [vmem:[%s183_s0] sm:$0xff] }
   0x3   :  { %v129_v7 = vpack.c.bf16 %v19_v6, %v18_v3 }
   0x4   :  { %127 = vmatpush3.bf16.msra.mxu0 %v126_v5 }
   0x5   :  { %128 = vmatprep.subr.bf16.mxu0 %v138_v0 }
   0x8   :  { %130 = vmatpush3.bf16.msra.mxu0 %v129_v7 }
   0xb   :  { %123 = vmatmul.mubr.msk.f32.vlgmr.msra.gmra.mrb[0].mxu0 %vm22_vm1, %v15_v8 }
  0xde   :  { %v92_v10 = vpop.f32.mrb[0].mxu0 }
  0xdf   :  { %v93_v11 = vadd.f32 %v92_v10, %v21_v9  ;;  %v124_v12 = vpop.f32.mrb[1].mxu0 }
  0xe1   :  { %v96_v13 = vsub.f32 0.0, %v93_v11 }
  0xe3   :  { %v97_v14 = vmul.f32 1.442695, %v96_v13 }
  0xe5   :  { %134 = vpow2.f32 %v97_v14 }
  0xef   :  { %v135_v15 = vpop.eup %134 }
  0xf0   :  { %v99_v16 = vadd.f32 1.0, %v135_v15 }
  0xf2   :  { %136 = vrcp.f32 %v99_v16 }
  0xfc   :  { %v137_v17 = vpop.eup %136 }
  0xfd   :  { %103 = vst.msk [vmem:[%s185_s3] sm:$0xff] %vm102_vm2, %v137_v17 }

</bundles_post_ra>
